<compile_context>
chip_gen: v7x
topology: tpu7x:2x2x1
jax: 0.10.0
libtpu: 0.0.40
codegen_flags: <defaults>
</compile_context>

<pallas_src>
import functools

import jax
import jax.numpy as jnp
from jax import lax
from jax.experimental import pallas as pl
from jax.experimental.pallas import tpu as pltpu

HIDDEN1 = 512
HIDDEN2 = 256
W3_ROWS = 8   # fc3 weight rows in the kernel (row 0 real, rest zero); 8 keeps
              # the output tile's sublane dimension legal/aligned.


def _round_up(x, m):
    return ((x + m - 1) // m) * m


def _choose_tiling(batch, tb_cap):
    """Pick (padded_batch, batch_tile).

    * tile rows are always a multiple of 8 (sublane alignment),
    * batches >= 512 rows get >= 2 grid steps so both v7x TensorCores get work,
    * tile is capped (default 1024) so activations stay a few MB of VMEM.
    """
    tb_cap = max(8, (int(tb_cap) // 8) * 8)
    b8 = _round_up(max(int(batch), 1), 8)
    if b8 < 512:
        tb = min(b8, tb_cap)                 # small batch: splitting only adds padding
    else:
        steps = max(2, pl.cdiv(b8, tb_cap))  # >= 2 "parallel" steps for v7x megacore
        tb = _round_up(pl.cdiv(b8, steps), 8)
    b_pad = _round_up(b8, tb)
    return b_pad, tb


def qnet_kernel(s_ref, a_ref, w1s_ref, w1a_ref, b1_ref, w2_ref, b2_ref,
                w3t_ref, b3_ref, o_ref):
    md = w1s_ref.dtype                      # matmul dtype (bf16 by default)

    # fc1 + ReLU -> [TB, 512].  Split matmul (state / action halves of w1)
    # replaces torch.cat on the inputs; both K=16 / K=8 dots hit the MXU.
    # (Fusing them into one K=32 dot is a known, minor further optimization.)
    h1 = (jnp.dot(s_ref[...].astype(md), w1s_ref[...],
                  preferred_element_type=jnp.float32)
          + jnp.dot(a_ref[...].astype(md), w1a_ref[...],
                    preferred_element_type=jnp.float32)
          + b1_ref[...])
    h1 = jnp.maximum(h1, 0.0)

    # fc2 + ReLU -> [TB, 256]
    h2 = jnp.dot(h1.astype(md), w2_ref[...],
                 preferred_element_type=jnp.float32) + b2_ref[...]
    h2 = jnp.maximum(h2, 0.0)

    # fc3, computed transposed: contract the last dims of w3t [8, 256] and
    # h2 [TB, 256] -> qT [8, TB] (the standard q @ k.T MXU pattern).  Row 0
    # holds the q values lane-major, so the store is a small dense (8, TB)
    # tile (32 B/row HBM writeback) instead of a 128-lane padded slab, and no
    # XLU transpose is needed.
    q_t = lax.dot_general(w3t_ref[...], h2.astype(md),
                          dimension_numbers=(((1,), (1,)), ((), ())),
                          preferred_element_type=jnp.float32)
    o_ref[...] = q_t + b3_ref[...]


def init_qnetwork_weights(key, num_inputs, num_actions):
    """f32 master weights, math layout (W: [fan_in, fan_out], b: [fan_out]).

    Mimics nn.Linear's default uniform(+-1/sqrt(fan_in)) init.
    """
    in_dim = num_inputs + num_actions
    k1w, k1b, k2w, k2b, k3w, k3b = jax.random.split(key, 6)

    def uni(k, shape, fan_in):
        bound = 1.0 / jnp.sqrt(jnp.float32(fan_in))
        return jax.random.uniform(k, shape, jnp.float32, -bound, bound)

    return {
        "w1": uni(k1w, (in_dim, HIDDEN1), in_dim),
        "b1": uni(k1b, (HIDDEN1,), in_dim),
        "w2": uni(k2w, (HIDDEN1, HIDDEN2), HIDDEN1),
        "b2": uni(k2b, (HIDDEN2,), HIDDEN1),
        "w3": uni(k3w, (HIDDEN2, 1), HIDDEN2),
        "b3": uni(k3b, (1,), HIDDEN2),
    }


def pack_qnetwork_params(weights, num_inputs, matmul_dtype=jnp.bfloat16):
    """One-time packing + dtype cast for the kernel (hoisted out of forward).

    Weights are stored in matmul_dtype (bf16 halves weight DMA and runs the MXU
    at native rate); biases stay f32 (bias add / ReLU run in f32 on the VPU).
    """
    w1 = weights["w1"]
    w1s = w1[:num_inputs].astype(matmul_dtype)
    w1a = w1[num_inputs:].astype(matmul_dtype)
    b1 = weights["b1"].reshape(1, HIDDEN1).astype(jnp.float32)
    w2 = weights["w2"].astype(matmul_dtype)
    b2 = weights["b2"].reshape(1, HIDDEN2).astype(jnp.float32)
    # fc3 weight laid out as rows (row 0 real, rest zero) for the transposed dot.
    w3t = jnp.zeros((W3_ROWS, HIDDEN2), matmul_dtype)
    w3t = w3t.at[0, :].set(weights["w3"][:, 0].astype(matmul_dtype))
    b3 = weights["b3"].reshape(1, 1).astype(jnp.float32)
    return (w1s, w1a, b1, w2, b2, w3t, b3)


@functools.partial(jax.jit, static_argnames=("tb",))
def qnetwork_forward(state, action, params, *, tb=1024):
    """Equivalent to QNetwork.forward(state, action) -> [B, 1] (f32)."""
    w1s, w1a, b1, w2, b2, w3t, b3 = params
    ni = w1s.shape[0]
    na = w1a.shape[0]
    B = state.shape[0]

    b_pad, TB = _choose_tiling(B, tb)
    num_tiles = b_pad // TB

    # Fast path: no wrapper-side copy at all when the batch is already aligned.
    s = state if B == b_pad else jnp.pad(state, ((0, b_pad - B), (0, 0)))
    a = action if B == b_pad else jnp.pad(action, ((0, b_pad - B), (0, 0)))

    batch_map = lambda i: (i, 0)
    const_map = lambda i: (0, 0)

    out = pl.pallas_call(
        qnet_kernel,
        out_shape=jax.ShapeDtypeStruct((num_tiles * W3_ROWS, TB), jnp.float32),
        grid=(num_tiles,),
        in_specs=[
            pl.BlockSpec((TB, ni), batch_map),             # state tile
            pl.BlockSpec((TB, na), batch_map),             # action tile
            pl.BlockSpec((ni, HIDDEN1), const_map),        # w1_state  (VMEM-resident)
            pl.BlockSpec((na, HIDDEN1), const_map),        # w1_action (VMEM-resident)
            pl.BlockSpec((1, HIDDEN1), const_map),         # b1
            pl.BlockSpec((HIDDEN1, HIDDEN2), const_map),   # w2
            pl.BlockSpec((1, HIDDEN2), const_map),         # b2
            pl.BlockSpec((W3_ROWS, HIDDEN2), const_map),   # w3 rows (row 0 real)
            pl.BlockSpec((1, 1), const_map),               # b3
        ],
        out_specs=pl.BlockSpec((W3_ROWS, TB), batch_map),
        compiler_params=pltpu.CompilerParams(
            dimension_semantics=("parallel",)),
    )(s, a, w1s, w1a, b1, w2, b2, w3t, b3)

    # Row 0 of each (8, TB) tile holds the q values lane-major; unpack to [B, 1].
    q = out.reshape(num_tiles, W3_ROWS, TB)[:, 0, :].reshape(b_pad, 1)
    return q if B == b_pad else q[:B]


if __name__ == "__main__":
    key = jax.random.PRNGKey(0)
    num_inputs, num_actions = 16, 8
    kw, ks1, ka1, ks2, ka2 = jax.random.split(key, 5)

    weights = init_qnetwork_weights(kw, num_inputs, num_actions)

    def reference(st, ac):
        x = jnp.concatenate([st, ac], axis=1)
        h = jnp.maximum(x @ weights["w1"] + weights["b1"], 0.0)
        h = jnp.maximum(h @ weights["w2"] + weights["b2"], 0.0)
        return h @ weights["w3"] + weights["b3"]

    # Small batch, f32 matmuls: tight check of the kernel math.
    state = jax.random.normal(ks1, (8, num_inputs), jnp.float32)
    action = jax.random.normal(ka1, (8, num_actions), jnp.float32)
    params_f32 = pack_qnetwork_params(weights, num_inputs, jnp.float32)
    q = jax.block_until_ready(qnetwork_forward(state, action, params_f32))
    ref = reference(state, action)
    assert q.shape == (8, 1)
    assert jnp.allclose(q, ref, atol=1e-4, rtol=1e-4)

    # Default bf16 matmul path (production config): looser tolerance — expected
    # numerics change from bf16 weights/activations (f32 accumulation).
    params = pack_qnetwork_params(weights, num_inputs)   # bf16 by default
    q_bf = jax.block_until_ready(qnetwork_forward(state, action, params))
    assert q_bf.shape == (8, 1)
    assert jnp.allclose(q_bf, ref, atol=5e-2, rtol=5e-2)

    # Larger, non-multiple-of-8 batch: exercises batch padding and a >= 2-step
    # "parallel" grid (both v7x TensorCores get a step).
    B2 = 601
    state2 = jax.random.normal(ks2, (B2, num_inputs), jnp.float32)
    action2 = jax.random.normal(ka2, (B2, num_actions), jnp.float32)
    q2 = jax.block_until_ready(qnetwork_forward(state2, action2, params))
    ref2 = reference(state2, action2)
    assert q2.shape == (B2, 1)
    assert jnp.allclose(q2, ref2, atol=5e-2, rtol=5e-2)

    print("KERNEL_OK")
</pallas_src>

<mosaic_0001>
module attributes {stable_mosaic.version = 11 : i64} {
  func.func @qnet_kernel(%arg0: i32, %arg1: memref<8x16xf32, #tpu.memory_space<vmem>>, %arg2: memref<8x8xf32, #tpu.memory_space<vmem>>, %arg3: memref<16x512xf32, #tpu.memory_space<vmem>>, %arg4: memref<8x512xf32, #tpu.memory_space<vmem>>, %arg5: memref<1x512xf32, #tpu.memory_space<vmem>>, %arg6: memref<512x256xf32, #tpu.memory_space<vmem>>, %arg7: memref<1x256xf32, #tpu.memory_space<vmem>>, %arg8: memref<8x256xf32, #tpu.memory_space<vmem>>, %arg9: memref<1x1xf32, #tpu.memory_space<vmem>>, %arg10: memref<8x8xf32, #tpu.memory_space<vmem>>) attributes {dimension_semantics = [#tpu.dimension_semantics<parallel>], iteration_bounds = array<i64: 1>, scalar_prefetch = 0 : i64, scratch_operands = 0 : i64, tpu.core_type = #tpu.core_type<tc>, window_params = [{transform_indices = @transform_0, window_bounds = array<i64: 8, 16>}, {transform_indices = @transform_1, window_bounds = array<i64: 8, 8>}, {pipeline_mode = #tpu.pipeline_mode<synchronous>, transform_indices = @transform_2, window_bounds = array<i64: 16, 512>}, {pipeline_mode = #tpu.pipeline_mode<synchronous>, transform_indices = @transform_3, window_bounds = array<i64: 8, 512>}, {pipeline_mode = #tpu.pipeline_mode<synchronous>, transform_indices = @transform_4, window_bounds = array<i64: 1, 512>}, {pipeline_mode = #tpu.pipeline_mode<synchronous>, transform_indices = @transform_5, window_bounds = array<i64: 512, 256>}, {pipeline_mode = #tpu.pipeline_mode<synchronous>, transform_indices = @transform_6, window_bounds = array<i64: 1, 256>}, {pipeline_mode = #tpu.pipeline_mode<synchronous>, transform_indices = @transform_7, window_bounds = array<i64: 8, 256>}, {pipeline_mode = #tpu.pipeline_mode<synchronous>, transform_indices = @transform_8, window_bounds = array<i64: 1, 1>}, {transform_indices = @transform_9, window_bounds = array<i64: 8, 8>}]} {
    %c0 = arith.constant 0 : index
    %c0_0 = arith.constant 0 : index
    %0 = vector.load %arg1[%c0, %c0_0] : memref<8x16xf32, #tpu.memory_space<vmem>>, vector<8x16xf32>
    %c0_1 = arith.constant 0 : index
    %c0_2 = arith.constant 0 : index
    %1 = vector.load %arg3[%c0_1, %c0_2] : memref<16x512xf32, #tpu.memory_space<vmem>>, vector<16x512xf32>
    %cst = arith.constant dense<0.000000e+00> : vector<8x512xf32>
    %2 = tpu.matmul %0, %1, %cst {dimension_numbers = #tpu.dot_dimension_numbers<[1], [0], [0], [1], [0, 0, 1, 1], [], []>} : vector<8x16xf32>, vector<16x512xf32>, vector<8x512xf32> -> vector<8x512xf32>
    %c0_3 = arith.constant 0 : index
    %c0_4 = arith.constant 0 : index
    %3 = vector.load %arg2[%c0_3, %c0_4] : memref<8x8xf32, #tpu.memory_space<vmem>>, vector<8x8xf32>
    %c0_5 = arith.constant 0 : index
    %c0_6 = arith.constant 0 : index
    %4 = vector.load %arg4[%c0_5, %c0_6] : memref<8x512xf32, #tpu.memory_space<vmem>>, vector<8x512xf32>
    %cst_7 = arith.constant dense<0.000000e+00> : vector<8x512xf32>
    %5 = tpu.matmul %3, %4, %cst_7 {dimension_numbers = #tpu.dot_dimension_numbers<[1], [0], [0], [1], [0, 0, 1, 1], [], []>} : vector<8x8xf32>, vector<8x512xf32>, vector<8x512xf32> -> vector<8x512xf32>
    %6 = arith.addf %2, %5 : vector<8x512xf32>
    %c0_8 = arith.constant 0 : index
    %c0_9 = arith.constant 0 : index
    %7 = vector.load %arg5[%c0_8, %c0_9] : memref<1x512xf32, #tpu.memory_space<vmem>>, vector<1x512xf32>
    %8 = vector.broadcast %7 : vector<1x512xf32> to vector<8x512xf32>
    %9 = arith.addf %6, %8 : vector<8x512xf32>
    %cst_10 = arith.constant 0.000000e+00 : f32
    %10 = vector.broadcast %cst_10 : f32 to vector<8x512xf32>
    %11 = arith.maximumf %9, %10 : vector<8x512xf32>
    %c0_11 = arith.constant 0 : index
    %c0_12 = arith.constant 0 : index
    %12 = vector.load %arg6[%c0_11, %c0_12] : memref<512x256xf32, #tpu.memory_space<vmem>>, vector<512x256xf32>
    %cst_13 = arith.constant dense<0.000000e+00> : vector<8x256xf32>
    %13 = tpu.matmul %11, %12, %cst_13 {dimension_numbers = #tpu.dot_dimension_numbers<[1], [0], [0], [1], [0, 0, 1, 1], [], []>} : vector<8x512xf32>, vector<512x256xf32>, vector<8x256xf32> -> vector<8x256xf32>
    %c0_14 = arith.constant 0 : index
    %c0_15 = arith.constant 0 : index
    %14 = vector.load %arg7[%c0_14, %c0_15] : memref<1x256xf32, #tpu.memory_space<vmem>>, vector<1x256xf32>
    %15 = vector.broadcast %14 : vector<1x256xf32> to vector<8x256xf32>
    %16 = arith.addf %13, %15 : vector<8x256xf32>
    %cst_16 = arith.constant 0.000000e+00 : f32
    %17 = vector.broadcast %cst_16 : f32 to vector<8x256xf32>
    %18 = arith.maximumf %16, %17 : vector<8x256xf32>
    %c0_17 = arith.constant 0 : index
    %c0_18 = arith.constant 0 : index
    %19 = vector.load %arg8[%c0_17, %c0_18] : memref<8x256xf32, #tpu.memory_space<vmem>>, vector<8x256xf32>
    %cst_19 = arith.constant dense<0.000000e+00> : vector<8x8xf32>
    %20 = tpu.matmul %19, %18, %cst_19 {dimension_numbers = #tpu.dot_dimension_numbers<[1], [1], [0], [0], [0, 0, 1, 0], [], []>} : vector<8x256xf32>, vector<8x256xf32>, vector<8x8xf32> -> vector<8x8xf32>
    %c0_20 = arith.constant 0 : index
    %c0_21 = arith.constant 0 : index
    %21 = vector.load %arg9[%c0_20, %c0_21] : memref<1x1xf32, #tpu.memory_space<vmem>>, vector<1x1xf32>
    %22 = vector.broadcast %21 : vector<1x1xf32> to vector<8x8xf32>
    %23 = arith.addf %20, %22 : vector<8x8xf32>
    %c0_22 = arith.constant 0 : index
    %c0_23 = arith.constant 0 : index
    %24 = vector.load %arg10[%c0_22, %c0_23] : memref<8x8xf32, #tpu.memory_space<vmem>>, vector<8x8xf32>
    tpu.vector_store %arg10[%c0_22, %c0_23], %23 {strides = array<i32>} : memref<8x8xf32, #tpu.memory_space<vmem>>, vector<8x8xf32>,
    return
  }
  func.func @transform_0(%arg0: i32) -> (i32, i32) {
    %c0_i32 = arith.constant 0 : i32
    %c0_i32_0 = arith.constant 0 : i32
    return %arg0, %c0_i32 : i32, i32
  }
  func.func @transform_1(%arg0: i32) -> (i32, i32) {
    %c0_i32 = arith.constant 0 : i32
    %c0_i32_0 = arith.constant 0 : i32
    return %arg0, %c0_i32 : i32, i32
  }
  func.func @transform_2(%arg0: i32) -> (i32, i32) {
    %c0_i32 = arith.constant 0 : i32
    %c0_i32_0 = arith.constant 0 : i32
    %c0_i32_1 = arith.constant 0 : i32
    return %c0_i32, %c0_i32_0 : i32, i32
  }
  func.func @transform_3(%arg0: i32) -> (i32, i32) {
    %c0_i32 = arith.constant 0 : i32
    %c0_i32_0 = arith.constant 0 : i32
    %c0_i32_1 = arith.constant 0 : i32
    return %c0_i32, %c0_i32_0 : i32, i32
  }
  func.func @transform_4(%arg0: i32) -> (i32, i32) {
    %c0_i32 = arith.constant 0 : i32
    %c0_i32_0 = arith.constant 0 : i32
    %c0_i32_1 = arith.constant 0 : i32
    return %c0_i32, %c0_i32_0 : i32, i32
  }
  func.func @transform_5(%arg0: i32) -> (i32, i32) {
    %c0_i32 = arith.constant 0 : i32
    %c0_i32_0 = arith.constant 0 : i32
    %c0_i32_1 = arith.constant 0 : i32
    return %c0_i32, %c0_i32_0 : i32, i32
  }
  func.func @transform_6(%arg0: i32) -> (i32, i32) {
    %c0_i32 = arith.constant 0 : i32
    %c0_i32_0 = arith.constant 0 : i32
    %c0_i32_1 = arith.constant 0 : i32
    return %c0_i32, %c0_i32_0 : i32, i32
  }
  func.func @transform_7(%arg0: i32) -> (i32, i32) {
    %c0_i32 = arith.constant 0 : i32
    %c0_i32_0 = arith.constant 0 : i32
    %c0_i32_1 = arith.constant 0 : i32
    return %c0_i32, %c0_i32_0 : i32, i32
  }
  func.func @transform_8(%arg0: i32) -> (i32, i32) {
    %c0_i32 = arith.constant 0 : i32
    %c0_i32_0 = arith.constant 0 : i32
    %c0_i32_1 = arith.constant 0 : i32
    return %c0_i32, %c0_i32_0 : i32, i32
  }
  func.func @transform_9(%arg0: i32) -> (i32, i32) {
    %c0_i32 = arith.constant 0 : i32
    %c0_i32_0 = arith.constant 0 : i32
    return %arg0, %c0_i32 : i32, i32
  }
}

</mosaic_0001>

<bundles_post_ra>
// kernel: qnetwork_forward.1
= control target key start
LH: loop header
LB: loop body
LE: loop exit
PB: predicated region body
PF: predicated region fallthrough
CT: control target
= control target key end

     0   :  { %s1234_s0 = inlined_call_operand.hbm [shape: f32[8,16], index: 0, kind: input, shape index: {}]   ;;  %s1235_s1 = inlined_call_operand.hbm [shape: f32[8,8], index: 1, kind: input, shape index: {}]   ;;  %s1236_s2 = inlined_call_operand.hbm [shape: f32[16,512], index: 2, kind: input, shape index: {}]   ;;  %s1237_s3 = inlined_call_operand.hbm [shape: f32[8,512], index: 3, kind: input, shape index: {}]   ;;  %s1238_s4 = inlined_call_operand.vmem [shape: f32[1,512], index: 4, kind: input, shape index: {}]   ;;  %s1239_s5 = inlined_call_operand.hbm [shape: f32[512,256], index: 5, kind: input, shape index: {}]   ;;  %s1240_s6 = inlined_call_operand.vmem [shape: f32[1,256], index: 6, kind: input, shape index: {}]   ;;  %s1241_s7 = inlined_call_operand.vmem [shape: f32[8,256], index: 7, kind: input, shape index: {}]   ;;  %s1242_s8 = inlined_call_operand.<no memory space> [shape: f32[1,1], index: 8, kind: input, shape index: {}]   ;;  %s1243_s9 = inlined_call_operand.vmem [shape: f32[8,8], index: 9, kind: output, shape index: {}]  }
   0x1   :  { %v14_v0 = vstv %s1242_s8 }
   0x2   :  { %15 = vst [vmem:[#allocation2] sm:$0x1] %v14_v0 }
   0x3   :  { %16 = vsyncpa [#allocation4], 0 }
   0x4   :  { %17 = vsyncpa [#allocation6], 0 }
   0x5   :  { %18 = vsyncpa [#allocation9], 0  ;;  %s1083_s11 = smov [#allocation5]   ;;  %s1084_s13 = smov [#allocation8]  }
   0x6   :  { %s35_s12 = sshll.u32 %s1083_s11, 4  ;;  %s57_s14 = sshll.u32 %s1084_s13, 4  ;;  %s36_s12 = int_to_ptr.vmem [resolvable:$true] %s35_s12  ;;  %s58_s14 = int_to_ptr.vmem [resolvable:$true] %s57_s14 }
   0x7   :  { %s967_s17 = scalar_lea.hbm %s1235_s1, 128 }
   0x8   :  { %p968_p0 = scmp.ne.s32.totalorder %s1235_s1, %s967_s17  ;;  %p971_p1 = scmp.lt.u32.totalorder %s967_s17, %s1235_s1 }
   0xa   :  { %p973_p2 = pnand %p971_p1, %p968_p0 }
   0xc   :  { %976 = shalt.err (!%p973_p2)
}
   0xd   :  { %s977_s21 = scalar_lea.vmem %s36_s12, 128  ;;  %p982_p4 = scmp.lt.s32.totalorder %s36_s12, %s36_s12 }
   0xe   :  { %p978_p3 = scmp.ne.s32.totalorder %s36_s12, %s977_s21  ;;  %p983_p5 = scmp.lt.s32.totalorder %s977_s21, %s977_s21 }
  0x10   :  { %p984_p6 = por %p983_p5, %p982_p4 }
  0x12   :  { %p985_p7 = pnand %p984_p6, %p978_p3 }
  0x14   :  { %988 = shalt.err (!%p985_p7)
}
  0x15   :  { %38 = dma.hbm_to_vmem [thread:$0]  %s1235_s1, 128, %s36_s12, [#allocation6]  }
  0x16   :  { %s989_s26 = scalar_lea.hbm %s1237_s3, 512 }
  0x17   :  { %p990_p8 = scmp.ne.s32.totalorder %s1237_s3, %s989_s26  ;;  %p993_p9 = scmp.lt.u32.totalorder %s989_s26, %s1237_s3 }
  0x19   :  { %p995_p10 = pnand %p993_p9, %p990_p8 }
  0x1b   :  { %998 = shalt.err (!%p995_p10)
}
  0x1c   :  { %s999_s10 = scalar_lea.vmem %s58_s14, 512  ;;  %p1004_p12 = scmp.lt.s32.totalorder %s58_s14, %s58_s14 }
  0x1d   :  { %p1000_p11 = scmp.ne.s32.totalorder %s58_s14, %s999_s10  ;;  %p1005_p13 = scmp.lt.s32.totalorder %s999_s10, %s999_s10 }
  0x1f   :  { %p1006_p0 = por %p1005_p13, %p1004_p12 }
  0x21   :  { %p1007_p1 = pnand %p1006_p0, %p1000_p11 }
  0x23   :  { %1010 = shalt.err (!%p1007_p1)
}
  0x24   :  { %60 = dma.hbm_to_vmem [thread:$0]  %s1237_s3, 512, %s58_s14, [#allocation9]  }
  0x25   :  { %s1085_s12 = smov [#allocation3]   ;;  %s1086_s15 = smov [#allocation7]  }
  0x26   :  { %s25_s13 = sshll.u32 %s1085_s12, 4  ;;  %s44_s16 = sshll.u32 %s1086_s15, 4  ;;  %s26_s13 = int_to_ptr.vmem [resolvable:$true] %s25_s13  ;;  %s1171_s16 = int_to_ptr.vmem [resolvable:$true] %s44_s16 }
  0x27   :  { %s1011_s19 = scalar_lea.hbm %s1234_s0, 128 }
  0x28   :  { %p1012_p2 = scmp.ne.s32.totalorder %s1234_s0, %s1011_s19  ;;  %p1015_p3 = scmp.lt.u32.totalorder %s1011_s19, %s1234_s0 }
  0x2a   :  { %p1017_p4 = pnand %p1015_p3, %p1012_p2 }
  0x2c   :  { %1020 = shalt.err (!%p1017_p4)
}
  0x2d   :  { %s1021_s3 = scalar_lea.vmem %s26_s13, 128  ;;  %p1026_p6 = scmp.lt.s32.totalorder %s26_s13, %s26_s13 }
  0x2e   :  { %p1022_p5 = scmp.ne.s32.totalorder %s26_s13, %s1021_s3  ;;  %p1027_p7 = scmp.lt.s32.totalorder %s1021_s3, %s1021_s3 }
  0x30   :  { %p1028_p8 = por %p1027_p7, %p1026_p6 }
  0x32   :  { %p1029_p9 = pnand %p1028_p8, %p1022_p5 }
  0x34   :  { %1032 = shalt.err (!%p1029_p9)
}
  0x35   :  { %28 = dma.hbm_to_vmem [thread:$0]  %s1234_s0, 128, %s26_s13, [#allocation4]  }
  0x36   :  { %s1033_s26 = scalar_lea.hbm %s1236_s2, 1024 }
  0x37   :  { %p1034_p10 = scmp.ne.s32.totalorder %s1236_s2, %s1033_s26  ;;  %p1037_p11 = scmp.lt.u32.totalorder %s1033_s26, %s1236_s2 }
  0x39   :  { %p1039_p12 = pnand %p1037_p11, %p1034_p10 }
  0x3b   :  { %1042 = shalt.err (!%p1039_p12)
}
  0x3c   :  { %s1043_s10 = scalar_lea.vmem %s1171_s16, 1024  ;;  %p1048_p0 = scmp.lt.s32.totalorder %s1171_s16, %s1171_s16 }
  0x3d   :  { %p1044_p13 = scmp.ne.s32.totalorder %s1171_s16, %s1043_s10  ;;  %p1049_p1 = scmp.lt.s32.totalorder %s1043_s10, %s1043_s10 }
  0x3f   :  { %p1050_p2 = por %p1049_p1, %p1048_p0 }
  0x41   :  { %p1051_p3 = pnand %p1050_p2, %p1044_p13 }
  0x43   :  { %1054 = shalt.err (!%p1051_p3)
}
  0x44   :  { %s1087_s0 = smov 512   ;;  %s1088_s1 = smov 32  }
  0x45   :  { %50 = dma.hbm_to_vmem [thread:$0]  %s1236_s2, 1024, %s1171_s16, [#allocation6], %s1087_s0, %s1087_s0, %s1088_s1  }
  0x46   :  { %s1089_s13 = smov [#allocation10]   ;;  %s1055_s19 = scalar_lea.hbm %s1239_s5, 16384 }
  0x47   :  { %s68_s15 = sshll.u32 %s1089_s13, 4  ;;  %p1056_p4 = scmp.ne.s32.totalorder %s1239_s5, %s1055_s19  ;;  %s69_s15 = int_to_ptr.vmem [resolvable:$true] %s68_s15 }
  0x48   :  { %p1059_p5 = scmp.lt.u32.totalorder %s1055_s19, %s1239_s5 }
  0x4a   :  { %p1061_p6 = pnand %p1059_p5, %p1056_p4 }
  0x4c   :  { %1064 = shalt.err (!%p1061_p6)
}
  0x4d   :  { %s1065_s3 = scalar_lea.vmem %s69_s15, 16384  ;;  %p1070_p8 = scmp.lt.s32.totalorder %s69_s15, %s69_s15 }
  0x4e   :  { %p1066_p7 = scmp.ne.s32.totalorder %s69_s15, %s1065_s3  ;;  %p1071_p9 = scmp.lt.s32.totalorder %s1065_s3, %s1065_s3 }
  0x50   :  { %p1072_p10 = por %p1071_p9, %p1070_p8 }
  0x52   :  { %p1073_p11 = pnand %p1072_p10, %p1066_p7 }
  0x54   :  { %1076 = shalt.err (!%p1073_p11)
}
  0x55   :  { %s1090_s2 = smov 256   ;;  %s1091_s16 = smov 16  }
  0x56   :  { %74 = dma.hbm_to_vmem [thread:$0]  %s1239_s5, 16384, %s69_s15, [#allocation9], %s1090_s2, %s1090_s2, %s1091_s16  }
  0x57   :  { %1077 = dma.done.wait [#allocation4], 128  }
  0x58   :  { %1078 = vsyncadd [#allocation4], 4294967168 }
  0x59   :  { %1079 = dma.done.wait [#allocation6], 1152  }
  0x5a   :  { %1080 = vsyncadd [#allocation6], 4294966144 }
  0x5b   :  { %1081 = dma.done.wait [#allocation9], 16896  }
  0x5c   :  { %1082 = vsyncadd [#allocation9], 4294950400  ;;  %v1092_v1 = vmov 0.0   ;;  %v107_v2 = vld [vmem:[#allocation8 + $0x8] sm:$0xff]  ;;  %v109_v3 = vld [vmem:[#allocation8 + $0x18] sm:$0xff]  ;;  %vm110_vm0 = vcmask 64512  }
  0x5d   :  { %178 = vmatprep.mubr.f32.mxu0 %v1092_v1  ;;  %249 = vmatprep.mubr.f32.mxu1 %v1092_v1  ;;  %v106_v4 = vld [vmem:[#allocation8] sm:$0xff]  ;;  %v108_v5 = vld [vmem:[#allocation8 + $0x10] sm:$0xff]  ;;  %v105_v6 = vld [vmem:[#allocation5] sm:$0xff]  ;;  %vm256_vm1 = vcmask 130048  }
  0x5e   :  { %114 = vmatprep.subr.mxu0 %v107_v2  ;;  %185 = vmatprep.subr.mxu1 %v109_v3  ;;  %v98_v7 = vld [vmem:[#allocation7 + $0x8] sm:$0xff]  ;;  %v97_v9 = vld [vmem:[#allocation7] sm:$0xff]  ;;  %v100_v13 = vld [vmem:[#allocation7 + $0x18] sm:$0xff] }
  0x5f   :  { %115 = vmatpush1.msra.mxu0 %v106_v4  ;;  %186 = vmatpush1.msra.mxu1 %v108_v5  ;;  %v102_v8 = vld [vmem:[#allocation7 + $0x28] sm:$0xff]  ;;  %v101_v10 = vld [vmem:[#allocation7 + $0x20] sm:$0xff]  ;;  %v104_v14 = vld [vmem:[#allocation7 + $0x38] sm:$0xff] }
  0x60   :  { %806 = vmatmul.mubr.msk.f32.vlgmr.msra.gmra.mrb[0].mxu0 %vm110_vm0, %v105_v6  ;;  %807 = vmatmul.mubr.msk.f32.vlgmr.msra.gmra.mrb[0].mxu1 %vm110_vm0, %v105_v6  ;;  %v811_v11 = vpack.c.bf16 %v102_v8, %v98_v7  ;;  %v813_v12 = vpack.c.bf16 %v101_v10, %v97_v9  ;;  %v99_v15 = vld [vmem:[#allocation7 + $0x10] sm:$0xff]  ;;  %v815_v16 = vpack.c.bf16 %v104_v14, %v100_v13  ;;  %v433_v18 = vld [vmem:[#allocation10 + $0x8] sm:$0xff]  ;;  %v435_v20 = vld [vmem:[#allocation10 + $0x18] sm:$0xff] }
  0x61   :  { %v103_v17 = vld [vmem:[#allocation7 + $0x30] sm:$0xff]  ;;  %324 = vmatprep.mubr.f32.mxu0 %v1092_v1  ;;  %395 = vmatprep.mubr.f32.mxu1 %v1092_v1  ;;  %v497_v21 = vld [vmem:[#allocation10 + $0x208] sm:$0xff]  ;;  %v499_v22 = vld [vmem:[#allocation10 + $0x218] sm:$0xff]  ;;  %v819_v24 = vpack.c.bf16 %v435_v20, %v433_v18 }
  0x62   :  { %812 = vmatprep.subr.bf16.mxu0 %v811_v11  ;;  %v817_v19 = vpack.c.bf16 %v103_v17, %v99_v15  ;;  %816 = vmatprep.subr.bf16.mxu1 %v815_v16  ;;  %v96_v23 = vld [vmem:[#allocation3] sm:$0xff]  ;;  %v883_v25 = vpack.c.bf16 %v499_v22, %v497_v21  ;;  %v432_v26 = vld [vmem:[#allocation10] sm:$0xff]  ;;  %v437_v30 = vld [vmem:[#allocation10 + $0x28] sm:$0xff] }
  0x63   :  { %814 = vmatpush1.bf16.msra.mxu0 %v813_v12  ;;  %v434_v27 = vld [vmem:[#allocation10 + $0x10] sm:$0xff]  ;;  %v496_v28 = vld [vmem:[#allocation10 + $0x200] sm:$0xff]  ;;  %v439_v31 = vld [vmem:[#allocation10 + $0x38] sm:$0xff] }
  0x64   :  { %818 = vmatpush1.bf16.msra.mxu1 %v817_v19  ;;  %v498_v29 = vld [vmem:[#allocation10 + $0x210] sm:$0xff]  ;;  %884 = vmatprep.subr.bf16.mxu0 %v883_v25  ;;  %v821_v32 = vpack.c.bf16 %v434_v27, %v432_v26  ;;  %v501_v34 = vld [vmem:[#allocation10 + $0x228] sm:$0xff]  ;;  %v503_v35 = vld [vmem:[#allocation10 + $0x238] sm:$0xff]  ;;  %v823_v37 = vpack.c.bf16 %v439_v31, %v437_v30 }
  0x65   :  { %820 = vmatprep.subr.bf16.mxu1 %v819_v24  ;;  %v885_v33 = vpack.c.bf16 %v498_v29, %v496_v28  ;;  %v436_v36 = vld [vmem:[#allocation10 + $0x20] sm:$0xff]  ;;  %v887_v38 = vpack.c.bf16 %v503_v35, %v501_v34  ;;  %v438_v39 = vld [vmem:[#allocation10 + $0x30] sm:$0xff]  ;;  %v441_v42 = vld [vmem:[#allocation10 + $0x48] sm:$0xff] }
  0x66   :  { %v500_v40 = vld [vmem:[#allocation10 + $0x220] sm:$0xff]  ;;  %v502_v41 = vld [vmem:[#allocation10 + $0x230] sm:$0xff]  ;;  %v443_v43 = vld [vmem:[#allocation10 + $0x58] sm:$0xff]  ;;  %v825_v46 = vpack.c.bf16 %v438_v39, %v436_v36 }
  0x67   :  { %v505_v44 = vld [vmem:[#allocation10 + $0x248] sm:$0xff]  ;;  %v507_v45 = vld [vmem:[#allocation10 + $0x258] sm:$0xff]  ;;  %v889_v47 = vpack.c.bf16 %v502_v41, %v500_v40  ;;  %v440_v48 = vld [vmem:[#allocation10 + $0x40] sm:$0xff]  ;;  %v827_v50 = vpack.c.bf16 %v443_v43, %v441_v42 }
  0x68   :  { %808 = vmatmul.mubr.msk.f32.vlgmr.msra.gmra.mrb[0].mxu0 %vm256_vm1, %v96_v23  ;;  %809 = vmatmul.mubr.msk.f32.vlgmr.msra.gmra.mrb[0].mxu1 %vm256_vm1, %v96_v23  ;;  %v442_v49 = vld [vmem:[#allocation10 + $0x50] sm:$0xff]  ;;  %v891_v51 = vpack.c.bf16 %v507_v45, %v505_v44  ;;  %v504_v52 = vld [vmem:[#allocation10 + $0x240] sm:$0xff]  ;;  %v445_v54 = vld [vmem:[#allocation10 + $0x68] sm:$0xff] }
  0x69   :  { %822 = vmatpush1.bf16.msra.mxu1 %v821_v32  ;;  %886 = vmatpush1.bf16.msra.mxu0 %v885_v33  ;;  %v506_v53 = vld [vmem:[#allocation10 + $0x250] sm:$0xff]  ;;  %v447_v55 = vld [vmem:[#allocation10 + $0x78] sm:$0xff]  ;;  %v509_v56 = vld [vmem:[#allocation10 + $0x268] sm:$0xff]  ;;  %v829_v58 = vpack.c.bf16 %v442_v49, %v440_v48 }
  0x6a   :  { %824 = vmatprep.subr.bf16.mxu1 %v823_v37  ;;  %888 = vmatprep.subr.bf16.mxu0 %v887_v38  ;;  %v511_v57 = vld [vmem:[#allocation10 + $0x278] sm:$0xff]  ;;  %v893_v59 = vpack.c.bf16 %v506_v53, %v504_v52  ;;  %v444_v60 = vld [vmem:[#allocation10 + $0x60] sm:$0xff]  ;;  %v446_v61 = vld [vmem:[#allocation10 + $0x70] sm:$0xff]  ;;  %v831_v62 = vpack.c.bf16 %v447_v55, %v445_v54 }
  0x6b   :  { %v895_v63 = vpack.c.bf16 %v511_v57, %v509_v56  ;;  %v508_v0 = vld [vmem:[#allocation10 + $0x260] sm:$0xff]  ;;  %v510_v1 = vld [vmem:[#allocation10 + $0x270] sm:$0xff]  ;;  %v449_v2 = vld [vmem:[#allocation10 + $0x88] sm:$0xff]  ;;  %v833_v6 = vpack.c.bf16 %v446_v61, %v444_v60 }
  0x6c   :  { %v451_v3 = vld [vmem:[#allocation10 + $0x98] sm:$0xff]  ;;  %v513_v4 = vld [vmem:[#allocation10 + $0x288] sm:$0xff]  ;;  %v897_v7 = vpack.c.bf16 %v510_v1, %v508_v0  ;;  %v448_v8 = vld [vmem:[#allocation10 + $0x80] sm:$0xff] }
  0x6d   :  { %826 = vmatpush1.bf16.msra.mxu1 %v825_v46  ;;  %890 = vmatpush1.bf16.msra.mxu0 %v889_v47  ;;  %v515_v5 = vld [vmem:[#allocation10 + $0x298] sm:$0xff]  ;;  %v450_v9 = vld [vmem:[#allocation10 + $0x90] sm:$0xff]  ;;  %v835_v10 = vpack.c.bf16 %v451_v3, %v449_v2  ;;  %v512_v12 = vld [vmem:[#allocation10 + $0x280] sm:$0xff] }
  0x6e   :  { %828 = vmatprep.subr.bf16.mxu1 %v827_v50  ;;  %892 = vmatprep.subr.bf16.mxu0 %v891_v51  ;;  %v899_v11 = vpack.c.bf16 %v515_v5, %v513_v4  ;;  %v514_v13 = vld [vmem:[#allocation10 + $0x290] sm:$0xff]  ;;  %v453_v14 = vld [vmem:[#allocation10 + $0xa8] sm:$0xff]  ;;  %v455_v15 = vld [vmem:[#allocation10 + $0xb8] sm:$0xff]  ;;  %v837_v18 = vpack.c.bf16 %v450_v9, %v448_v8 }
  0x6f   :  { %v517_v16 = vld [vmem:[#allocation10 + $0x2a8] sm:$0xff]  ;;  %v519_v17 = vld [vmem:[#allocation10 + $0x2b8] sm:$0xff]  ;;  %v901_v19 = vpack.c.bf16 %v514_v13, %v512_v12  ;;  %v452_v20 = vld [vmem:[#allocation10 + $0xa0] sm:$0xff]  ;;  %v839_v22 = vpack.c.bf16 %v455_v15, %v453_v14 }
  0x70   :  { %v454_v21 = vld [vmem:[#allocation10 + $0xb0] sm:$0xff]  ;;  %v903_v23 = vpack.c.bf16 %v519_v17, %v517_v16  ;;  %v516_v24 = vld [vmem:[#allocation10 + $0x2a0] sm:$0xff]  ;;  %v457_v26 = vld [vmem:[#allocation10 + $0xc8] sm:$0xff] }
  0x71   :  { %830 = vmatpush1.bf16.msra.mxu1 %v829_v58  ;;  %894 = vmatpush1.bf16.msra.mxu0 %v893_v59  ;;  %v518_v25 = vld [vmem:[#allocation10 + $0x2b0] sm:$0xff]  ;;  %v459_v27 = vld [vmem:[#allocation10 + $0xd8] sm:$0xff]  ;;  %v521_v28 = vld [vmem:[#allocation10 + $0x2c8] sm:$0xff]  ;;  %v841_v30 = vpack.c.bf16 %v454_v21, %v452_v20 }
  0x72   :  { %832 = vmatprep.subr.bf16.mxu1 %v831_v62  ;;  %896 = vmatprep.subr.bf16.mxu0 %v895_v63  ;;  %v523_v29 = vld [vmem:[#allocation10 + $0x2d8] sm:$0xff]  ;;  %v905_v31 = vpack.c.bf16 %v518_v25, %v516_v24  ;;  %v456_v32 = vld [vmem:[#allocation10 + $0xc0] sm:$0xff]  ;;  %v458_v33 = vld [vmem:[#allocation10 + $0xd0] sm:$0xff]  ;;  %v843_v34 = vpack.c.bf16 %v459_v27, %v457_v26 }
  0x73   :  { %v907_v35 = vpack.c.bf16 %v523_v29, %v521_v28  ;;  %v520_v36 = vld [vmem:[#allocation10 + $0x2c0] sm:$0xff]  ;;  %v522_v37 = vld [vmem:[#allocation10 + $0x2d0] sm:$0xff]  ;;  %v461_v38 = vld [vmem:[#allocation10 + $0xe8] sm:$0xff]  ;;  %v845_v42 = vpack.c.bf16 %v458_v33, %v456_v32 }
  0x74   :  { %v463_v39 = vld [vmem:[#allocation10 + $0xf8] sm:$0xff]  ;;  %v525_v40 = vld [vmem:[#allocation10 + $0x2e8] sm:$0xff]  ;;  %v909_v43 = vpack.c.bf16 %v522_v37, %v520_v36  ;;  %v460_v44 = vld [vmem:[#allocation10 + $0xe0] sm:$0xff] }
  0x75   :  { %834 = vmatpush1.bf16.msra.mxu1 %v833_v6  ;;  %898 = vmatpush1.bf16.msra.mxu0 %v897_v7  ;;  %v527_v41 = vld [vmem:[#allocation10 + $0x2f8] sm:$0xff]  ;;  %v462_v45 = vld [vmem:[#allocation10 + $0xf0] sm:$0xff]  ;;  %v847_v46 = vpack.c.bf16 %v463_v39, %v461_v38  ;;  %v524_v48 = vld [vmem:[#allocation10 + $0x2e0] sm:$0xff] }
  0x76   :  { %836 = vmatprep.subr.bf16.mxu1 %v835_v10  ;;  %900 = vmatprep.subr.bf16.mxu0 %v899_v11  ;;  %v911_v47 = vpack.c.bf16 %v527_v41, %v525_v40  ;;  %v526_v49 = vld [vmem:[#allocation10 + $0x2f0] sm:$0xff]  ;;  %v465_v50 = vld [vmem:[#allocation10 + $0x108] sm:$0xff]  ;;  %v467_v51 = vld [vmem:[#allocation10 + $0x118] sm:$0xff]  ;;  %v849_v54 = vpack.c.bf16 %v462_v45, %v460_v44 }
  0x77   :  { %v529_v52 = vld [vmem:[#allocation10 + $0x308] sm:$0xff]  ;;  %v531_v53 = vld [vmem:[#allocation10 + $0x318] sm:$0xff]  ;;  %v913_v55 = vpack.c.bf16 %v526_v49, %v524_v48  ;;  %v464_v56 = vld [vmem:[#allocation10 + $0x100] sm:$0xff]  ;;  %v851_v58 = vpack.c.bf16 %v467_v51, %v465_v50 }
  0x78   :  { %v466_v57 = vld [vmem:[#allocation10 + $0x110] sm:$0xff]  ;;  %v915_v59 = vpack.c.bf16 %v531_v53, %v529_v52  ;;  %v528_v60 = vld [vmem:[#allocation10 + $0x300] sm:$0xff]  ;;  %v469_v62 = vld [vmem:[#allocation10 + $0x128] sm:$0xff] }
  0x79   :  { %838 = vmatpush1.bf16.msra.mxu1 %v837_v18  ;;  %902 = vmatpush1.bf16.msra.mxu0 %v901_v19  ;;  %v530_v61 = vld [vmem:[#allocation10 + $0x310] sm:$0xff]  ;;  %v471_v63 = vld [vmem:[#allocation10 + $0x138] sm:$0xff]  ;;  %v533_v0 = vld [vmem:[#allocation10 + $0x328] sm:$0xff]  ;;  %v853_v2 = vpack.c.bf16 %v466_v57, %v464_v56 }
  0x7a   :  { %840 = vmatprep.subr.bf16.mxu1 %v839_v22  ;;  %904 = vmatprep.subr.bf16.mxu0 %v903_v23  ;;  %v535_v1 = vld [vmem:[#allocation10 + $0x338] sm:$0xff]  ;;  %v917_v3 = vpack.c.bf16 %v530_v61, %v528_v60  ;;  %v468_v4 = vld [vmem:[#allocation10 + $0x120] sm:$0xff]  ;;  %v470_v5 = vld [vmem:[#allocation10 + $0x130] sm:$0xff]  ;;  %v855_v6 = vpack.c.bf16 %v471_v63, %v469_v62 }
  0x7b   :  { %v919_v7 = vpack.c.bf16 %v535_v1, %v533_v0  ;;  %v532_v8 = vld [vmem:[#allocation10 + $0x320] sm:$0xff]  ;;  %v534_v9 = vld [vmem:[#allocation10 + $0x330] sm:$0xff]  ;;  %v473_v10 = vld [vmem:[#allocation10 + $0x148] sm:$0xff]  ;;  %v857_v14 = vpack.c.bf16 %v470_v5, %v468_v4 }
  0x7c   :  { %v475_v11 = vld [vmem:[#allocation10 + $0x158] sm:$0xff]  ;;  %v537_v12 = vld [vmem:[#allocation10 + $0x348] sm:$0xff]  ;;  %v921_v15 = vpack.c.bf16 %v534_v9, %v532_v8  ;;  %v472_v16 = vld [vmem:[#allocation10 + $0x140] sm:$0xff] }
  0x7d   :  { %842 = vmatpush1.bf16.msra.mxu1 %v841_v30  ;;  %906 = vmatpush1.bf16.msra.mxu0 %v905_v31  ;;  %v539_v13 = vld [vmem:[#allocation10 + $0x358] sm:$0xff]  ;;  %v474_v17 = vld [vmem:[#allocation10 + $0x150] sm:$0xff]  ;;  %v859_v18 = vpack.c.bf16 %v475_v11, %v473_v10  ;;  %v536_v20 = vld [vmem:[#allocation10 + $0x340] sm:$0xff] }
  0x7e   :  { %844 = vmatprep.subr.bf16.mxu1 %v843_v34  ;;  %908 = vmatprep.subr.bf16.mxu0 %v907_v35  ;;  %v923_v19 = vpack.c.bf16 %v539_v13, %v537_v12  ;;  %v538_v21 = vld [vmem:[#allocation10 + $0x350] sm:$0xff]  ;;  %v477_v22 = vld [vmem:[#allocation10 + $0x168] sm:$0xff]  ;;  %v479_v23 = vld [vmem:[#allocation10 + $0x178] sm:$0xff]  ;;  %v861_v26 = vpack.c.bf16 %v474_v17, %v472_v16 }
  0x7f   :  { %v541_v24 = vld [vmem:[#allocation10 + $0x368] sm:$0xff]  ;;  %v543_v25 = vld [vmem:[#allocation10 + $0x378] sm:$0xff]  ;;  %v925_v27 = vpack.c.bf16 %v538_v21, %v536_v20  ;;  %v476_v28 = vld [vmem:[#allocation10 + $0x160] sm:$0xff]  ;;  %v863_v30 = vpack.c.bf16 %v479_v23, %v477_v22  ;;  %v404_v20 = vlaneseq }
  0x80   :  { %v478_v29 = vld [vmem:[#allocation10 + $0x170] sm:$0xff]  ;;  %v927_v31 = vpack.c.bf16 %v543_v25, %v541_v24  ;;  %v540_v32 = vld [vmem:[#allocation10 + $0x360] sm:$0xff]  ;;  %v481_v34 = vld [vmem:[#allocation10 + $0x188] sm:$0xff] }
  0x81   :  { %846 = vmatpush1.bf16.msra.mxu1 %v845_v42  ;;  %910 = vmatpush1.bf16.msra.mxu0 %v909_v43  ;;  %v542_v33 = vld [vmem:[#allocation10 + $0x370] sm:$0xff]  ;;  %v483_v35 = vld [vmem:[#allocation10 + $0x198] sm:$0xff]  ;;  %v545_v36 = vld [vmem:[#allocation10 + $0x388] sm:$0xff]  ;;  %v865_v38 = vpack.c.bf16 %v478_v29, %v476_v28  ;;  %v405_v21 = vshrl.u32 %v404_v20, 7 }
  0x82   :  { %848 = vmatprep.subr.bf16.mxu1 %v847_v46  ;;  %912 = vmatprep.subr.bf16.mxu0 %v911_v47  ;;  %v547_v37 = vld [vmem:[#allocation10 + $0x398] sm:$0xff]  ;;  %v929_v39 = vpack.c.bf16 %v542_v33, %v540_v32  ;;  %v480_v40 = vld [vmem:[#allocation10 + $0x180] sm:$0xff]  ;;  %v482_v41 = vld [vmem:[#allocation10 + $0x190] sm:$0xff]  ;;  %v867_v42 = vpack.c.bf16 %v483_v35, %v481_v34 }
  0x83   :  { %v931_v43 = vpack.c.bf16 %v547_v37, %v545_v36  ;;  %v544_v44 = vld [vmem:[#allocation10 + $0x380] sm:$0xff]  ;;  %v546_v45 = vld [vmem:[#allocation10 + $0x390] sm:$0xff]  ;;  %v485_v46 = vld [vmem:[#allocation10 + $0x1a8] sm:$0xff]  ;;  %v869_v50 = vpack.c.bf16 %v482_v41, %v480_v40  ;;  %v406_v22 = vsub.s32 0, %v405_v21  ;;  %v414_v23 = vsub.s32 2, %v405_v21 }
  0x84   :  { %v487_v47 = vld [vmem:[#allocation10 + $0x1b8] sm:$0xff]  ;;  %v549_v48 = vld [vmem:[#allocation10 + $0x3a8] sm:$0xff]  ;;  %v933_v51 = vpack.c.bf16 %v546_v45, %v544_v44  ;;  %v484_v52 = vld [vmem:[#allocation10 + $0x1a0] sm:$0xff]  ;;  %v410_v25 = vsub.s32 1, %v405_v21  ;;  %v1093_v45 = vmov 0  }
  0x85   :  { %850 = vmatpush1.bf16.msra.mxu1 %v849_v54  ;;  %914 = vmatpush1.bf16.msra.mxu0 %v913_v55  ;;  %v551_v49 = vld [vmem:[#allocation10 + $0x3b8] sm:$0xff]  ;;  %v486_v53 = vld [vmem:[#allocation10 + $0x1b0] sm:$0xff]  ;;  %v871_v54 = vpack.c.bf16 %v487_v47, %v485_v46  ;;  %v548_v56 = vld [vmem:[#allocation10 + $0x3a0] sm:$0xff] }
  0x86   :  { %852 = vmatprep.subr.bf16.mxu1 %v851_v58  ;;  %916 = vmatprep.subr.bf16.mxu0 %v915_v59  ;;  %v935_v55 = vpack.c.bf16 %v551_v49, %v549_v48  ;;  %v550_v57 = vld [vmem:[#allocation10 + $0x3b0] sm:$0xff]  ;;  %v489_v58 = vld [vmem:[#allocation10 + $0x1c8] sm:$0xff]  ;;  %v491_v59 = vld [vmem:[#allocation10 + $0x1d8] sm:$0xff]  ;;  %v873_v62 = vpack.c.bf16 %v486_v53, %v484_v52 }
  0x87   :  { %v553_v60 = vld [vmem:[#allocation10 + $0x3c8] sm:$0xff]  ;;  %v555_v61 = vld [vmem:[#allocation10 + $0x3d8] sm:$0xff]  ;;  %v937_v63 = vpack.c.bf16 %v550_v57, %v548_v56  ;;  %v875_v0 = vpack.c.bf16 %v491_v59, %v489_v58  ;;  %v552_v4 = vld [vmem:[#allocation10 + $0x3c0] sm:$0xff]  ;;  %966 = vset.pattern.permute.xlu0 %v1093_v45 }
  0x88   :  { %v939_v1 = vpack.c.bf16 %v555_v61, %v553_v60  ;;  %v493_v8 = vld [vmem:[#allocation10 + $0x1e8] sm:$0xff]  ;;  %v495_v9 = vld [vmem:[#allocation10 + $0x1f8] sm:$0xff]  ;;  %v492_v13 = vld [vmem:[#allocation10 + $0x1e0] sm:$0xff] }
  0x89   :  { %854 = vmatpush1.bf16.msra.mxu1 %v853_v2  ;;  %918 = vmatpush1.bf16.msra.mxu0 %v917_v3  ;;  %v488_v2 = vld [vmem:[#allocation10 + $0x1c0] sm:$0xff]  ;;  %v490_v3 = vld [vmem:[#allocation10 + $0x1d0] sm:$0xff]  ;;  %v557_v10 = vld [vmem:[#allocation10 + $0x3e8] sm:$0xff]  ;;  %v879_v11 = vpack.c.bf16 %v495_v9, %v493_v8 }
  0x8a   :  { %856 = vmatprep.subr.bf16.mxu1 %v855_v6  ;;  %920 = vmatprep.subr.bf16.mxu0 %v919_v7  ;;  %v877_v5 = vpack.c.bf16 %v490_v3, %v488_v2  ;;  %v554_v6 = vld [vmem:[#allocation10 + $0x3d0] sm:$0xff]  ;;  %v559_v12 = vld [vmem:[#allocation10 + $0x3f8] sm:$0xff]  ;;  %v556_v17 = vld [vmem:[#allocation10 + $0x3e0] sm:$0xff] }
  0x8b   :  { %v941_v7 = vpack.c.bf16 %v554_v6, %v552_v4  ;;  %v402_v24 = vld [vmem:[%s1238_s4] sm:$0xf] }
  0x8c   :  { %v415_v28 = vrot.slane %v402_v24, %v414_v23  ;;  %v411_v29 = vrot.slane %v402_v24, %v410_v25  ;;  %v810_v44 = vld [vmem:[#allocation2] ss:$0 sm:$0xff] }
  0x8d   :  { %858 = vmatpush1.bf16.msra.mxu1 %v857_v14  ;;  %922 = vmatpush1.bf16.msra.mxu0 %v921_v15  ;;  %v494_v14 = vld [vmem:[#allocation10 + $0x1f0] sm:$0xff]  ;;  %v943_v15 = vpack.c.bf16 %v559_v12, %v557_v10 }
  0x8e   :  { %860 = vmatprep.subr.bf16.mxu1 %v859_v18  ;;  %924 = vmatprep.subr.bf16.mxu0 %v923_v19  ;;  %v881_v16 = vpack.c.bf16 %v494_v14, %v492_v13  ;;  %v558_v18 = vld [vmem:[#allocation10 + $0x3f0] sm:$0xff] }
  0x8f   :  { %v945_v19 = vpack.c.bf16 %v558_v18, %v556_v17  ;;  %725 = vperm.xlu0 %966, %v810_v44   ;;  %v560_v46 = vld [vmem:[%s1240_s6] sm:$0x3] }
  0x90   :  { %v565_v47 = vrot.slane %v560_v46, %v406_v22  ;;  %v569_v48 = vrot.slane %v560_v46, %v410_v25  ;;  %v716_v59 = vld [vmem:[%s1241_s7] sm:$0xff] }
  0x91   :  { %862 = vmatpush1.bf16.msra.mxu1 %v861_v26  ;;  %926 = vmatpush1.bf16.msra.mxu0 %v925_v27  ;;  %v418_v26 = vsub.s32 3, %v405_v21  ;;  %v407_v27 = vrot.slane %v402_v24, %v406_v22 }
  0x92   :  { %864 = vmatprep.subr.bf16.mxu1 %v863_v30  ;;  %928 = vmatprep.subr.bf16.mxu0 %v927_v31 }
  0x93   :  { %v419_v30 = vrot.slane %v402_v24, %v418_v26 }
  0x95   :  { %866 = vmatpush1.bf16.msra.mxu1 %v865_v38  ;;  %930 = vmatpush1.bf16.msra.mxu0 %v929_v39 }
  0x96   :  { %868 = vmatprep.subr.bf16.mxu1 %v867_v42  ;;  %932 = vmatprep.subr.bf16.mxu0 %v931_v43  ;;  %v717_v43 = vld [vmem:[%s1241_s7 + $0x8] sm:$0xff] }
  0x99   :  { %870 = vmatpush1.bf16.msra.mxu1 %v869_v50  ;;  %934 = vmatpush1.bf16.msra.mxu0 %v933_v51 }
  0x9a   :  { %872 = vmatprep.subr.bf16.mxu1 %v871_v54  ;;  %936 = vmatprep.subr.bf16.mxu0 %v935_v55 }
  0x9d   :  { %874 = vmatpush1.bf16.msra.mxu1 %v873_v62  ;;  %938 = vmatpush1.bf16.msra.mxu0 %v937_v63 }
  0x9e   :  { %876 = vmatprep.subr.bf16.mxu1 %v875_v0  ;;  %940 = vmatprep.subr.bf16.mxu0 %v939_v1 }
  0xa1   :  { %878 = vmatpush1.bf16.msra.mxu1 %v877_v5  ;;  %942 = vmatpush1.bf16.msra.mxu0 %v941_v7 }
  0xa2   :  { %880 = vmatprep.subr.bf16.mxu1 %v879_v11  ;;  %944 = vmatprep.subr.bf16.mxu0 %v943_v15 }
  0xa5   :  { %882 = vmatpush1.bf16.msra.mxu1 %v881_v16  ;;  %946 = vmatpush1.bf16.msra.mxu0 %v945_v19 }
 0x10e   :  { %v726_v60 = vpop.permute.xlu0 %725 }
 0x13b   :  { %v326_v31 = vpop.f32.mrb[0].mxu0  ;;  %v397_v32 = vpop.f32.mrb[0].mxu1 }
 0x13c   :  { %v424_v33 = vadd.f32 %v407_v27, %v326_v31  ;;  %v426_v34 = vadd.f32 %v415_v28, %v397_v32  ;;  %v328_v35 = vpop.f32.mrb[1].mxu0  ;;  %v399_v36 = vpop.f32.mrb[1].mxu1 }
 0x13d   :  { %v425_v37 = vadd.f32 %v411_v29, %v328_v35  ;;  %v427_v38 = vadd.f32 %v419_v30, %v399_v36 }
 0x13e   :  { %v428_v41 = vmax.f32 %v424_v33, 0.0  ;;  %v430_v42 = vmax.f32 %v426_v34, 0.0 }
 0x13f   :  { %v429_v39 = vmax.f32 %v425_v37, 0.0  ;;  %v431_v40 = vmax.f32 %v427_v38, 0.0 }
 0x141   :  { %636 = vmatprep.mubr.f32.mxu1 %v429_v39  ;;  %707 = vmatprep.mubr.f32.mxu0 %v431_v40 }
 0x142   :  { %637 = vmatmul.mubr.f32.vlgmr.msra.gmra.mrb[2].mxu1 %v428_v41  ;;  %708 = vmatmul.mubr.f32.vlgmr.msra.gmra.mrb[2].mxu0 %v430_v42 }
 0x143   :  { %792 = vmatprep.mubr.f32.mxu1 %v717_v43 }
 0x215   :  { %v638_v49 = vpop.f32.mrb[2].mxu1  ;;  %v709_v50 = vpop.f32.mrb[2].mxu0 }
 0x216   :  { %v639_v51 = vadd.f32 %v638_v49, %v565_v47  ;;  %v640_v52 = vpop.f32.mrb[3].mxu1  ;;  %v711_v53 = vpop.f32.mrb[3].mxu0 }
 0x217   :  { %v641_v54 = vadd.f32 %v640_v52, %v569_v48 }
 0x218   :  { %v710_v55 = vadd.f32 %v709_v50, %v639_v51 }
 0x219   :  { %v712_v56 = vadd.f32 %v711_v53, %v641_v54 }
 0x21a   :  { %v714_v58 = vmax.f32 %v710_v55, 0.0 }
 0x21b   :  { %v715_v57 = vmax.f32 %v712_v56, 0.0 }
 0x21d   :  { %728 = vmatprep.subr.mxu1 %v715_v57 }
 0x21e   :  { %729 = vmatpush1.xpose.msra.mxu1 %v714_v58 }
 0x221   :  { %793 = vmatmul.mubr.f32.vlgmr.msra.gmra.mrb[4].mxu1 %v716_v59 }
 0x2f4   :  { %v794_v61 = vpop.f32.mrb[4].mxu1 }
 0x2f5   :  { %v795_v62 = vadd.f32 %v794_v61, %v726_v60  ;;  %v796_v63 = vpop.f32.mrb[5].mxu1 }
 0x2f7   :  { %798 = vst.msk [vmem:[%s1243_s9] sm:$0xff] %vm110_vm0, %v795_v62 }
 0x2f8   :  { %803 = vsyncpa [#allocation4], 1 }
 0x2f9   :  { %804 = vsyncpa [#allocation6], 1 }
 0x2fa   :  { %805 = vsyncpa [#allocation9], 1 }

</bundles_post_ra>
